<compile_context>
chip_gen: v7x
topology: tpu7x:2x2x1
jax: 0.10.0
libtpu: 0.0.40
codegen_flags: <defaults>
</compile_context>

<pallas_src>
import math

import jax
import jax.numpy as jnp
from jax.experimental import pallas as pl
from jax.experimental.pallas import tpu as pltpu


LANE = 128


def _round_up(x, m):
    return ((x + m - 1) // m) * m


def _pad_last(a, target):
    pad = target - a.shape[-1]
    if pad <= 0:
        return a
    cfg = [(0, 0)] * (a.ndim - 1) + [(0, pad)]
    return jnp.pad(a, cfg)


# ------ fused kernel: out = relu(adj @ (X @ W_conv) + b_conv) @ W_mlp + b_mlp ------

def _gnn_fused_kernel(adj_ref, x_ref, wconv_ref, bconv_ref, wmlp_ref, bmlp_ref,
                      o_ref, acc_ref):
    k = pl.program_id(1)

    @pl.when(k == 0)
    def _():
        acc_ref[...] = jnp.zeros_like(acc_ref)

    # support k-tile: [tk, F_in] @ [F_in, H_pad] -> f32 accumulate -> bf16 operand.
    sup_k = jnp.dot(
        x_ref[...], wconv_ref[...], preferred_element_type=jnp.float32
    ).astype(jnp.bfloat16)

    # adj row tile [tm, tk] (bf16) @ support k-tile [tk, H_pad] (bf16) -> f32 accumulate.
    acc_ref[...] += jnp.dot(adj_ref[...], sup_k, preferred_element_type=jnp.float32)

    @pl.when(k == pl.num_programs(1) - 1)
    def _():
        # f32 epilogue: conv-bias add + ReLU, applied once per output tile.
        h = jnp.maximum(acc_ref[...] + bconv_ref[...], 0.0)
        # TODO(synk): nn.Dropout is identity in eval mode; skipped (no RNG masking).
        out = jnp.dot(
            h.astype(wmlp_ref.dtype), wmlp_ref[...], preferred_element_type=jnp.float32
        ) + bmlp_ref[...]
        o_ref[...] = out.astype(o_ref.dtype)


def gnn_classifier_forward(x, adj, w_conv, b_conv, w_mlp, b_mlp, *, tm=128, tk=128):
    """GNN_Classifier(layer='gcn') forward, inference mode.

    x:      [N, H] node features (f32)
    adj:    [N, N] dense (row-normalized) adjacency (f32)
    w_conv: [H, H], b_conv: [H]  -- GraphConv parameters
    w_mlp:  [H, C], b_mlp:  [C]  -- classifier Linear parameters (weight already [in, out])
    Returns [N, C] f32 logits.
    """
    n, h = x.shape
    f_in = h
    c = w_mlp.shape[1]
    h_pad = max(LANE, _round_up(h, LANE))
    c_pad = max(LANE, _round_up(c, LANE))

    tm = min(tm, n)
    tk = min(tk, n)
    assert n % tm == 0 and n % tk == 0, "N must be divisible by the tile sizes"
    assert tm % 8 == 0 and (tk % 128 == 0 or tk == n), "tiles must respect (8,128) alignment"

    # Zero-pad lane dims; padded columns remain exactly zero through the whole pipeline.
    w_conv_p = _pad_last(w_conv, h_pad).astype(jnp.bfloat16)                # [F_in, H_pad]
    b_conv_p = _pad_last(b_conv.reshape(1, h), h_pad).astype(jnp.float32)   # [1, H_pad]
    w_mlp_p = jnp.pad(w_mlp, ((0, h_pad - h), (0, c_pad - c))).astype(jnp.bfloat16)
    b_mlp_p = _pad_last(b_mlp.reshape(1, c), c_pad).astype(jnp.float32)     # [1, C_pad]

    x_bf = x.astype(jnp.bfloat16)
    adj_bf = adj.astype(jnp.bfloat16)

    out_pad = pl.pallas_call(
        _gnn_fused_kernel,
        out_shape=jax.ShapeDtypeStruct((n, c_pad), jnp.float32),
        grid=(n // tm, n // tk),
        in_specs=[
            pl.BlockSpec((tm, tk), lambda i, k: (i, k)),         # adj tile
            pl.BlockSpec((tk, f_in), lambda i, k: (k, 0)),       # x k-tile (full feature extent)
            pl.BlockSpec((f_in, h_pad), lambda i, k: (0, 0)),    # W_conv (resident)
            pl.BlockSpec((1, h_pad), lambda i, k: (0, 0)),       # conv bias (resident)
            pl.BlockSpec((h_pad, c_pad), lambda i, k: (0, 0)),   # mlp weight (resident)
            pl.BlockSpec((1, c_pad), lambda i, k: (0, 0)),       # mlp bias (resident)
        ],
        out_specs=pl.BlockSpec((tm, c_pad), lambda i, k: (i, 0)),
        scratch_shapes=[pltpu.VMEM((tm, h_pad), jnp.float32)],
        compiler_params=pltpu.CompilerParams(
            dimension_semantics=("parallel", "arbitrary")),
    )(adj_bf, x_bf, w_conv_p, b_conv_p, w_mlp_p, b_mlp_p)

    return out_pad[:, :c]


if __name__ == "__main__":
    N = 256       # number of graph nodes
    NHID = 32     # hidden features (GraphConv in/out)
    NCLASS = 16   # classifier output classes

    key = jax.random.PRNGKey(0)
    kx, kadj, kwc, kbc, kwm, kbm = jax.random.split(key, 6)

    # GraphConv.reset_parameters(): uniform(-stdv, stdv), stdv = 1/sqrt(out_features)
    stdv = 1.0 / math.sqrt(NHID)
    w_conv = jax.random.uniform(kwc, (NHID, NHID), jnp.float32, -stdv, stdv)
    b_conv = jax.random.uniform(kbc, (NHID,), jnp.float32, -stdv, stdv)

    # mlp = nn.Linear(nhid, nclass); GNN_Classifier.reset_parameters(): weight ~ N(0, 0.05)
    w_mlp = 0.05 * jax.random.normal(kwm, (NHID, NCLASS), jnp.float32)
    lim = 1.0 / math.sqrt(NHID)
    b_mlp = jax.random.uniform(kbm, (NCLASS,), jnp.float32, -lim, lim)

    x = jax.random.normal(kx, (N, NHID), jnp.float32)
    # Dense row-normalized random adjacency (dense stand-in for the sparse adj in torch.spmm).
    adj_raw = jax.random.uniform(kadj, (N, N), jnp.float32)
    adj = adj_raw / jnp.sum(adj_raw, axis=-1, keepdims=True)

    out = gnn_classifier_forward(x, adj, w_conv, b_conv, w_mlp, b_mlp, tm=128, tk=128)
    out = jax.block_until_ready(out)
    assert out.shape == (N, NCLASS)

    # Reference with the same bf16-operand / f32-accumulate precision path.
    xb = x.astype(jnp.bfloat16)
    ab = adj.astype(jnp.bfloat16)
    sup_ref = jnp.dot(xb, w_conv.astype(jnp.bfloat16), preferred_element_type=jnp.float32)
    h_ref = jnp.dot(ab, sup_ref.astype(jnp.bfloat16), preferred_element_type=jnp.float32) + b_conv
    h_ref = jnp.maximum(h_ref, 0.0)
    ref_bf16 = jnp.dot(h_ref.astype(jnp.bfloat16), w_mlp.astype(jnp.bfloat16),
                       preferred_element_type=jnp.float32) + b_mlp
    assert jnp.allclose(out, ref_bf16, atol=1e-2, rtol=1e-2), "mismatch vs bf16-path reference"

    # Pure f32 semantic reference (looser tolerance for bf16 operand rounding).
    ref_f32 = jnp.maximum(adj @ (x @ w_conv) + b_conv, 0.0) @ w_mlp + b_mlp
    assert jnp.allclose(out, ref_f32, atol=3e-2, rtol=3e-2), "mismatch vs f32 reference"

    print("KERNEL_OK")
</pallas_src>

<mosaic_0001>
module attributes {stable_mosaic.version = 11 : i64} {
  func.func @_gnn_fused_kernel(%arg0: i32, %arg1: i32, %arg2: memref<128x128xbf16, #tpu.memory_space<vmem>>, %arg3: memref<128x32xbf16, #tpu.memory_space<vmem>>, %arg4: memref<32x128xbf16, #tpu.memory_space<vmem>>, %arg5: memref<1x128xf32, #tpu.memory_space<vmem>>, %arg6: memref<128x128xbf16, #tpu.memory_space<vmem>>, %arg7: memref<1x128xf32, #tpu.memory_space<vmem>>, %arg8: memref<128x128xf32, #tpu.memory_space<vmem>>, %arg9: memref<128x128xf32, #tpu.memory_space<vmem>>) attributes {dimension_semantics = [#tpu.dimension_semantics<parallel>, #tpu.dimension_semantics<arbitrary>], iteration_bounds = array<i64: 2, 2>, scalar_prefetch = 0 : i64, scratch_operands = 1 : i64, tpu.core_type = #tpu.core_type<tc>, window_params = [{transform_indices = @transform_0, window_bounds = array<i64: 128, 128>}, {transform_indices = @transform_1, window_bounds = array<i64: 128, 32>}, {pipeline_mode = #tpu.pipeline_mode<synchronous>, transform_indices = @transform_2, window_bounds = array<i64: 32, 128>}, {pipeline_mode = #tpu.pipeline_mode<synchronous>, transform_indices = @transform_3, window_bounds = array<i64: 1, 128>}, {pipeline_mode = #tpu.pipeline_mode<synchronous>, transform_indices = @transform_4, window_bounds = array<i64: 128, 128>}, {pipeline_mode = #tpu.pipeline_mode<synchronous>, transform_indices = @transform_5, window_bounds = array<i64: 1, 128>}, {transform_indices = @transform_6, window_bounds = array<i64: 128, 128>}]} {
    %c0_i32 = arith.constant 0 : i32
    %0 = arith.cmpi eq, %arg1, %c0_i32 : i32
    %1 = arith.extui %0 : i1 to i32
    %c0_i32_0 = arith.constant 0 : i32
    %2 = arith.cmpi ne, %1, %c0_i32_0 : i32
    scf.if %2 {
      %cst_12 = arith.constant 0.000000e+00 : f32
      %15 = vector.broadcast %cst_12 : f32 to vector<128x128xf32>
      %c0_13 = arith.constant 0 : index
      %c0_14 = arith.constant 0 : index
      %16 = vector.load %arg9[%c0_13, %c0_14] : memref<128x128xf32, #tpu.memory_space<vmem>>, vector<128x128xf32>
      tpu.vector_store %arg9[%c0_13, %c0_14], %15 {strides = array<i32>} : memref<128x128xf32, #tpu.memory_space<vmem>>, vector<128x128xf32>,
    } else {
    }
    %c0 = arith.constant 0 : index
    %c0_1 = arith.constant 0 : index
    %3 = vector.load %arg3[%c0, %c0_1] : memref<128x32xbf16, #tpu.memory_space<vmem>>, vector<128x32xbf16>
    %c0_2 = arith.constant 0 : index
    %c0_3 = arith.constant 0 : index
    %4 = vector.load %arg4[%c0_2, %c0_3] : memref<32x128xbf16, #tpu.memory_space<vmem>>, vector<32x128xbf16>
    %cst = arith.constant dense<0.000000e+00> : vector<128x128xf32>
    %5 = tpu.matmul %3, %4, %cst {dimension_numbers = #tpu.dot_dimension_numbers<[1], [0], [0], [1], [0, 0, 1, 1], [], []>} : vector<128x32xbf16>, vector<32x128xbf16>, vector<128x128xf32> -> vector<128x128xf32>
    %6 = arith.truncf %5 : vector<128x128xf32> to vector<128x128xbf16>
    %c0_4 = arith.constant 0 : index
    %c0_5 = arith.constant 0 : index
    %7 = vector.load %arg9[%c0_4, %c0_5] : memref<128x128xf32, #tpu.memory_space<vmem>>, vector<128x128xf32>
    %c0_6 = arith.constant 0 : index
    %c0_7 = arith.constant 0 : index
    %8 = vector.load %arg2[%c0_6, %c0_7] : memref<128x128xbf16, #tpu.memory_space<vmem>>, vector<128x128xbf16>
    %cst_8 = arith.constant dense<0.000000e+00> : vector<128x128xf32>
    %9 = tpu.matmul %8, %6, %cst_8 {dimension_numbers = #tpu.dot_dimension_numbers<[1], [0], [0], [1], [0, 0, 1, 1], [], []>} : vector<128x128xbf16>, vector<128x128xbf16>, vector<128x128xf32> -> vector<128x128xf32>
    %10 = arith.addf %7, %9 : vector<128x128xf32>
    %c0_9 = arith.constant 0 : index
    %c0_10 = arith.constant 0 : index
    %11 = vector.load %arg9[%c0_9, %c0_10] : memref<128x128xf32, #tpu.memory_space<vmem>>, vector<128x128xf32>
    tpu.vector_store %arg9[%c0_9, %c0_10], %10 {strides = array<i32>} : memref<128x128xf32, #tpu.memory_space<vmem>>, vector<128x128xf32>,
    %c1_i32 = arith.constant 1 : i32
    %12 = arith.cmpi eq, %arg1, %c1_i32 : i32
    %13 = arith.extui %12 : i1 to i32
    %c0_i32_11 = arith.constant 0 : i32
    %14 = arith.cmpi ne, %13, %c0_i32_11 : i32
    scf.if %14 {
      %c0_12 = arith.constant 0 : index
      %c0_13 = arith.constant 0 : index
      %15 = vector.load %arg9[%c0_12, %c0_13] : memref<128x128xf32, #tpu.memory_space<vmem>>, vector<128x128xf32>
      %c0_14 = arith.constant 0 : index
      %c0_15 = arith.constant 0 : index
      %16 = vector.load %arg5[%c0_14, %c0_15] : memref<1x128xf32, #tpu.memory_space<vmem>>, vector<1x128xf32>
      %17 = vector.broadcast %16 : vector<1x128xf32> to vector<128x128xf32>
      %18 = arith.addf %15, %17 : vector<128x128xf32>
      %cst_16 = arith.constant 0.000000e+00 : f32
      %19 = vector.broadcast %cst_16 : f32 to vector<128x128xf32>
      %20 = arith.maximumf %18, %19 : vector<128x128xf32>
      %21 = arith.truncf %20 : vector<128x128xf32> to vector<128x128xbf16>
      %c0_17 = arith.constant 0 : index
      %c0_18 = arith.constant 0 : index
      %22 = vector.load %arg6[%c0_17, %c0_18] : memref<128x128xbf16, #tpu.memory_space<vmem>>, vector<128x128xbf16>
      %cst_19 = arith.constant dense<0.000000e+00> : vector<128x128xf32>
      %23 = tpu.matmul %21, %22, %cst_19 {dimension_numbers = #tpu.dot_dimension_numbers<[1], [0], [0], [1], [0, 0, 1, 1], [], []>} : vector<128x128xbf16>, vector<128x128xbf16>, vector<128x128xf32> -> vector<128x128xf32>
      %c0_20 = arith.constant 0 : index
      %c0_21 = arith.constant 0 : index
      %24 = vector.load %arg7[%c0_20, %c0_21] : memref<1x128xf32, #tpu.memory_space<vmem>>, vector<1x128xf32>
      %25 = vector.broadcast %24 : vector<1x128xf32> to vector<128x128xf32>
      %26 = arith.addf %23, %25 : vector<128x128xf32>
      %c0_22 = arith.constant 0 : index
      %c0_23 = arith.constant 0 : index
      %27 = vector.load %arg8[%c0_22, %c0_23] : memref<128x128xf32, #tpu.memory_space<vmem>>, vector<128x128xf32>
      tpu.vector_store %arg8[%c0_22, %c0_23], %26 {strides = array<i32>} : memref<128x128xf32, #tpu.memory_space<vmem>>, vector<128x128xf32>,
    } else {
    }
    return
  }
  func.func @transform_0(%arg0: i32, %arg1: i32) -> (i32, i32) {
    %c0_i32 = arith.constant 0 : i32
    return %arg0, %arg1 : i32, i32
  }
  func.func @transform_1(%arg0: i32, %arg1: i32) -> (i32, i32) {
    %c0_i32 = arith.constant 0 : i32
    %c0_i32_0 = arith.constant 0 : i32
    return %arg1, %c0_i32 : i32, i32
  }
  func.func @transform_2(%arg0: i32, %arg1: i32) -> (i32, i32) {
    %c0_i32 = arith.constant 0 : i32
    %c0_i32_0 = arith.constant 0 : i32
    %c0_i32_1 = arith.constant 0 : i32
    return %c0_i32, %c0_i32_0 : i32, i32
  }
  func.func @transform_3(%arg0: i32, %arg1: i32) -> (i32, i32) {
    %c0_i32 = arith.constant 0 : i32
    %c0_i32_0 = arith.constant 0 : i32
    %c0_i32_1 = arith.constant 0 : i32
    return %c0_i32, %c0_i32_0 : i32, i32
  }
  func.func @transform_4(%arg0: i32, %arg1: i32) -> (i32, i32) {
    %c0_i32 = arith.constant 0 : i32
    %c0_i32_0 = arith.constant 0 : i32
    %c0_i32_1 = arith.constant 0 : i32
    return %c0_i32, %c0_i32_0 : i32, i32
  }
  func.func @transform_5(%arg0: i32, %arg1: i32) -> (i32, i32) {
    %c0_i32 = arith.constant 0 : i32
    %c0_i32_0 = arith.constant 0 : i32
    %c0_i32_1 = arith.constant 0 : i32
    return %c0_i32, %c0_i32_0 : i32, i32
  }
  func.func @transform_6(%arg0: i32, %arg1: i32) -> (i32, i32) {
    %c0_i32 = arith.constant 0 : i32
    %c0_i32_0 = arith.constant 0 : i32
    return %arg0, %c0_i32 : i32, i32
  }
}

</mosaic_0001>

<bundles_post_ra>
// kernel: tpu_custom_call.1
= control target key start
LH: loop header
LB: loop body
LE: loop exit
PB: predicated region body
PF: predicated region fallthrough
CT: control target
= control target key end

     0   :  { %s1983_s0 = inlined_call_operand.hbm [shape: bf16[256,256], index: 0, kind: input, shape index: {}]   ;;  %s1984_s1 = inlined_call_operand.vmem [shape: bf16[256,32], index: 1, kind: input, shape index: {}]   ;;  %s1985_s2 = inlined_call_operand.vmem [shape: bf16[32,128], index: 2, kind: input, shape index: {}]   ;;  %s1986_s3 = inlined_call_operand.vmem [shape: f32[1,128], index: 3, kind: input, shape index: {}]   ;;  %s1987_s4 = inlined_call_operand.vmem [shape: bf16[128,128], index: 4, kind: input, shape index: {}]   ;;  %s1988_s5 = inlined_call_operand.vmem [shape: f32[1,128], index: 5, kind: input, shape index: {}]   ;;  %s1989_s6 = inlined_call_operand.hbm [shape: f32[256,128], index: 6, kind: output, shape index: {}]  }
   0x1   :  { %1994 = sst [smem:[#allocation13_spill]] %s1989_s6 }
   0x2   :  { %11 = vsyncpa [#allocation4], 0 }
   0x3   :  { %13 = vsyncpa [#allocation4 + $0x1], 0 }
   0x4   :  { %14 = vsyncpa [#allocation5], 0 }
   0x5   :  { %16 = vsyncpa [#allocation5 + $0x1], 0  ;;  %s1652_s21 = smov 0   ;;  %s1654_s22 = smov 0  }
   0x6   :  { %s1656_s23 = smov 0   ;;  %s1658_s24 = smov 0  }
   0x7   :  { %s1660_s25 = smov 0   ;;  %s1662_s26 = smov 0  }
   0x8   :  { %s1664_s27 = smov 0   ;;  %s1666_s28 = smov 0  }
   0x9   :  { %s1668_s29 = smov 0   ;;  %s1670_s30 = smov 0  }
   0xa   :  { %s1672_s7 = smov 0  }
   0xb LB: > { %1995 = sst [smem:[#allocation9_spill]] %s1595_s28  ;;  %s1105_s8 = sadd.s32 4294967295, %s1607_s7   ;;  %s1607_s7 = sphi %s1672_s7, %s22_s7   ;;  %s1603_s30 = sphi %s1670_s30, %s2022_s30   ;;  %s1599_s29 = sphi %s1668_s29, %s2021_s29   ;;  %s1595_s28 = sphi %s1666_s28, %s2020_s28   ;;  %s1591_s27 = sphi %s1664_s27, %s2019_s27   ;;  %s1587_s26 = sphi %s1662_s26, %s2018_s26   ;;  %s1583_s25 = sphi %s1660_s25, %s2017_s25   ;;  %s1579_s24 = sphi %s1658_s24, %s2016_s24   ;;  %s1575_s23 = sphi %s1656_s23, %s2015_s23   ;;  %s1571_s22 = sphi %s1654_s22, %s2014_s22   ;;  %s1567_s21 = sphi %s1652_s21, %s2013_s21  }
   0xc   : > { %s1106_s9 = sadd.s32 4294967294, %s1607_s7   ;;  %s31_s10 = sadd.s32 1, %s1599_s29 }
   0xd   : > { %s34_s11 = sadd.s32 1, %s1603_s30  ;;  %p32_p0 = scmp.ge.s32.totalorder %s31_s10, 2 }
   0xe   : > { %s43_s12 = sadd.s32 1, %s1587_s26  ;;  %p50_p1 = scmp.ne.s32.totalorder %s1587_s26, %s1583_s25 }
   0xf   : > { %p51_p2 = scmp.eq.s32.totalorder %s1607_s7, 0  ;;  %s2024_s10 = smov (%p32_p0, %s31_s10), 0 }
  0x10   : > { %1996 = sst [smem:[#allocation10_spill]] %s2024_s10  ;;  %s2026_s11 = smov (!%p32_p0, %s34_s11), %s1603_s30 }
  0x11   : > { %s39_s13 = ssub.s32 %s1599_s29, %s2024_s10  ;;  %p1718_p3 = por %p51_p2, %p50_p1 }
  0x12   : > { %p36_p4 = scmp.ge.s32.totalorder %s2026_s11, 2  ;;  %p56_p5 = scmp.ne.s32.totalorder %s1583_s25, %s1579_s24 }
  0x13   : > { %p57_p6 = scmp.eq.s32.totalorder %s1105_s8, 0  ;;  %s179_s15 = sadd.s32 1, %s1575_s23 }
  0x14   : > { %s2028_s11 = smov (%p36_p4, %s2026_s11), 0  ;;  %p189_p8 = scmp.ne.s32.totalorder %s1575_s23, %s1571_s22 }
  0x15   : > { %1998 = sst [smem:[#allocation11_spill]] %s2028_s11  ;;  %p1726_p7 = por %p57_p6, %p56_p5 }
  0x16   : > { %s38_s17 = ssub.s32 %s1603_s30, %s2028_s11  ;;  %p190_p9 = scmp.eq.s32.totalorder %s1105_s8, 3 }
  0x17   : > { %s40_s18 = sor.u32 %s39_s13, %s38_s17  ;;  %p177_p10 = scmp.eq.s32.totalorder %s38_s17, 0 }
  0x18   : > { %p41_p11 = scmp.eq.s32.totalorder %s40_s18, 0  ;;  %p1734_p12 = por %p190_p9, %p189_p8 }
  0x19   : > { %s1739_s20 = scalar_select %p177_p10, %s1575_s23, %s179_s15  }
  0x1a   : > { %s2000_s19 = scalar_select %p1734_p12, 1, 0 }
  0x1b   : > { %2001 = sst [smem:[#allocation12_spill]] %s1739_s20  ;;  %p195_p13 = scmp.ne.s32.totalorder %s1571_s22, %s1567_s21 }
  0x1c   : > { %s1742_s24 = scalar_select %p41_p11, %s1587_s26, %s43_s12  }
  0x1d   : > { %p196_p0 = scmp.eq.s32.totalorder %s1106_s9, 3  ;;  %p1333_p1 = scmp.lt.s32.totalorder %s1607_s7, 4 }
  0x1e   : > { %s228_s8 = sand.u32 1, %s1587_s26   ;;  %s1161_s17 = sshll.u32 %s1603_s30, 5 }
  0x1f   : > { %p1747_p2 = por %p196_p0, %p195_p13  ;;  %s1109_s13 = sshll.u32 %s228_s8, 6 }
  0x20   : > { %s238_s18 = sadd.s32 %s1599_s29, %s1161_s17  ;;  %s232_s11 = scalar_lea.vmem [#allocation3], %s1109_s13 }
  0x21   : > { %s2002_s10 = scalar_select %p1747_p2, 1, 0 }
  0x22   : > { %s241_s6 = sshll.u32 %s232_s11, 4  ;;  %s1112_s28 = sshll.u32 %s238_s18, 6  ;;  %s1754_s6 = int_to_ptr.vmem [resolvable:$true] %s241_s6 }
  0x23   : > { %s1759_s12 = scalar_lea.hbm %s1983_s0, %s1112_s28  ;;  %p1763_p4 = pnand %p1333_p1, %p1718_p3 }
  0x24   : > { %s1767_s11 = scalar_lea.sflag [#allocation4], %s228_s8  ;;  %s1455_s13 = scalar_lea.hbm %s1759_s12, 1024 }
  0x25   : > { %p1456_p5 = scmp.ne.s32.totalorder %s1759_s12, %s1455_s13  ;;  %p1457_p6 = pneg %p1763_p4 }
  0x26   : > { %s1460_s20 = scalar_lea.hbm %s1983_s0, 4096  ;;  %p1461_p3 = scmp.lt.u32.totalorder %s1759_s12, %s1983_s0 }
  0x27   : > { %p1458_p8 = pnand %p1457_p6, %p1456_p5  ;;  %p1462_p10 = scmp.lt.u32.totalorder %s1460_s20, %s1455_s13 }
  0x28   : > { %p1464_p13 = scmp.lt.u32.totalorder %s1455_s13, %s1759_s12 }
  0x29   : > { %p1459_p9 = pneg %p1458_p8  ;;  %p1463_p11 = por %p1462_p10, %p1461_p3 }
  0x2b   : > { %p1465_p0 = por %p1464_p13, %p1463_p11 }
  0x2d   : > { %p1466_p1 = pnand %p1465_p0, %p1459_p9 }
  0x2f   : > { %1469 = shalt.err (!%p1466_p1)
}
  0x30   : > { %s1470_s8 = scalar_lea.vmem %s1754_s6, 1024  ;;  %s1609_s15 = smov [#allocation3]  }
  0x31   : > { %p1471_p5 = scmp.ne.s32.totalorder %s1754_s6, %s1470_s8  ;;  %s1475_s28 = sshll.u32 %s1609_s15, 4  ;;  %s1476_s28 = int_to_ptr.vmem [resolvable:$false] %s1475_s28 }
  0x32   : > { %s1477_s14 = scalar_lea.vmem %s1476_s28, 2048  ;;  %p1478_p12 = scmp.lt.s32.totalorder %s1754_s6, %s1476_s28 }
  0x33   : > { %p1473_p8 = pnand %p1471_p5, %p1457_p6  ;;  %p1479_p3 = scmp.lt.s32.totalorder %s1477_s14, %s1470_s8 }
  0x35   : > { %p1474_p2 = pneg %p1473_p8  ;;  %p1480_p10 = por %p1479_p3, %p1478_p12 }
  0x37   : > { %p1481_p11 = pnand %p1480_p10, %p1474_p2 }
  0x39   : > { %1484 = shalt.err (!%p1481_p11)
}
  0x3a   : > { %s1610_s13 = smov 128   ;;  %s1611_s20 = smov 64  }
  0x3b   : > { %s1612_s17 = smov 4   ;;  %p1113_p6 = scmp.ge.s32.totalorder %s1607_s7, 1 }
  0x3c   : > { %1328 = dma.hbm_to_vmem [thread:$0]  (!%p1763_p4), %s1759_s12, 1024, %s1754_s6, %s1767_s11, %s1610_s13, %s1611_s20, %s1612_s17  }
  0x3d   : > { %p258_p9 = scmp.lt.s32.totalorder %s1607_s7, 5 }
  0x3f   : > { %p259_p13 = pnand %p1113_p6, %p258_p9 }
  0x40   : > { %s264_s18 = sand.u32 (!%p259_p13), 1, %s1583_s25  }
  0x41   : > { %262 = sbr.rel (%p259_p13) target bundleno = 838 (0x346), region = 44  ;;  %s1114_s8 = sshll.u32 (!%p259_p13), %s264_s18, 6 }
  0x42   : > { %s265_s15 = scalar_lea.sflag (!%p259_p13), [#allocation4], %s264_s18  ;;  %s1798_s28 = scalar_lea.vmem (!%p259_p13), [#allocation3], %s1114_s8 }
  0x48   : > { %1558 = dma.done.wait (%p1726_p7), %s265_s15, 1024  }
  0x49   : > { %1560 = vsyncadd (%p1726_p7), %s265_s15, 4294966272  ;;  %s299_s6 = sand.u32 1, %s1571_s22   ;;  %s1116_s12 = sshll.u32 %s1591_s27, 4 }
  0x4a   : > { %s1115_s9 = sshll.u32 %s299_s6, 7  ;;  %p304_p12 = scmp.lt.s32.totalorder %s1116_s12, 31 }
  0x4b   : > { %s1813_s17 = scalar_lea.vmem [#allocation6], %s1115_s9  ;;  %p1118_p2 = scmp.ne.s32.totalorder %s1591_s27, 0 }
  0x4c   : > { %s2030_s12 = smov (!%p304_p12, %s1116_s12), 31  ;;  %v1613_v0 = vmov (!%p1118_p2), 0.0  }
  0x4d   : > { %s1117_s11 = sshll.u32 %s2030_s12, 2  ;;  %314 = sbr.rel (%p1118_p2) target bundleno = 85 (0x55), region = 52  ;;  %315 = vst [vmem:[#allocation2] sm:$0xff] (!%p1118_p2), %v1613_v0  ;;  %316 = vst [vmem:[#allocation2 + $0x8] sm:$0xff] (!%p1118_p2), %v1613_v0 }
  0x4e   : > { %s1811_s20 = scalar_lea.vmem %s1984_s1, %s1117_s11  ;;  %317 = vst [vmem:[#allocation2 + $0x10] sm:$0xff] (!%p1118_p2), %v1613_v0  ;;  %318 = vst [vmem:[#allocation2 + $0x18] sm:$0xff] (!%p1118_p2), %v1613_v0 }
  0x4f   : > { %319 = vst [vmem:[#allocation2 + $0x20] sm:$0xff] (!%p1118_p2), %v1613_v0  ;;  %320 = vst [vmem:[#allocation2 + $0x28] sm:$0xff] (!%p1118_p2), %v1613_v0 }
  0x50   : > { %321 = vst [vmem:[#allocation2 + $0x30] sm:$0xff] (!%p1118_p2), %v1613_v0  ;;  %322 = vst [vmem:[#allocation2 + $0x38] sm:$0xff] (!%p1118_p2), %v1613_v0 }
  0x51   : > { %323 = vst [vmem:[#allocation2 + $0x40] sm:$0xff] (!%p1118_p2), %v1613_v0  ;;  %324 = vst [vmem:[#allocation2 + $0x48] sm:$0xff] (!%p1118_p2), %v1613_v0 }
  0x52   : > { %325 = vst [vmem:[#allocation2 + $0x50] sm:$0xff] (!%p1118_p2), %v1613_v0  ;;  %326 = vst [vmem:[#allocation2 + $0x58] sm:$0xff] (!%p1118_p2), %v1613_v0 }
  0x53   : > { %327 = vst [vmem:[#allocation2 + $0x60] sm:$0xff] (!%p1118_p2), %v1613_v0  ;;  %328 = vst [vmem:[#allocation2 + $0x68] sm:$0xff] (!%p1118_p2), %v1613_v0 }
  0x54   : > { %329 = vst [vmem:[#allocation2 + $0x70] sm:$0xff] %v1613_v0  ;;  %330 = vst [vmem:[#allocation2 + $0x78] sm:$0xff] %v1613_v0 }
  0x55 PF: > { %v1429_v1 = vld [vmem:[%s1985_s2] sm:$0xff]   ;;  %v1430_v2 = vld [vmem:[%s1985_s2 + $0x8] sm:$0xff]   ;;  %vm403_vm0 = vcmask 261120   ;;  %v1433_v5 = vld [vmem:[%s1811_s20 + $0x10] sm:$0xff]   ;;  %p1145_p7 = scmp.ne.s32.totalorder %s1591_s27, 1 }
  0x56   : > { %1205 = vmatprep.subr.bf16.mxu0 %v1429_v1  ;;  %v1431_v3 = vld [vmem:[%s1811_s20] sm:$0xff]   ;;  %v1432_v4 = vld [vmem:[%s1811_s20 + $0x8] sm:$0xff]   ;;  %v1434_v6 = vld [vmem:[%s1811_s20 + $0x18] sm:$0xff]  }
  0x57   : > { %1206 = vmatpush3.bf16.msra.mxu0 %v1429_v1  ;;  %1209 = vmatprep.mubr.msk.bf16.mxu0 %vm403_vm0, %v1431_v3  ;;  %v1435_v7 = vld [vmem:[%s1811_s20 + $0x20] sm:$0xff]   ;;  %v1436_v8 = vld [vmem:[%s1811_s20 + $0x28] sm:$0xff]   ;;  %v1437_v9 = vld [vmem:[%s1811_s20 + $0x30] sm:$0xff]  }
  0x58   : > { %1207 = vmatprep.subr.bf16.mxu0 %v1430_v2  ;;  %v1438_v10 = vld [vmem:[%s1811_s20 + $0x38] sm:$0xff]   ;;  %v1439_v11 = vld [vmem:[%s1798_s28 + $0x10] sm:$0xff]   ;;  %v1443_v12 = vld [vmem:[%s1798_s28] sm:$0xff]  }
  0x59   : > { %1245 = vmatprep.mubr.bf16.mxu1 %v1439_v11  ;;  %v1440_v37 = vld [vmem:[%s1798_s28 + $0x18] sm:$0xff]   ;;  %v1444_v38 = vld [vmem:[%s1798_s28 + $0x8] sm:$0xff]   ;;  %v1441_v39 = vld [vmem:[%s1798_s28 + $0x20] sm:$0xff]  }
  0x5a   : > { %v1442_v40 = vld [vmem:[%s1798_s28 + $0x28] sm:$0xff]   ;;  %v1445_v41 = vld [vmem:[%s1798_s28 + $0x30] sm:$0xff]   ;;  %v1446_v42 = vld [vmem:[%s1798_s28 + $0x38] sm:$0xff]  }
  0x5b   : > { %1208 = vmatpush3.bf16.msra.mxu0 %v1430_v2  ;;  %v539_v43 = vld [vmem:[#allocation2 + $0x30] sm:$0xff]  ;;  %v537_v45 = vld [vmem:[#allocation2 + $0x20] sm:$0xff]  ;;  %v540_v48 = vld [vmem:[#allocation2 + $0x38] sm:$0xff] }
  0x5c   : > { %v535_v44 = vld [vmem:[#allocation2 + $0x10] sm:$0xff]  ;;  %v533_v46 = vld [vmem:[#allocation2] sm:$0xff]  ;;  %v536_v50 = vld [vmem:[#allocation2 + $0x18] sm:$0xff] }
  0x5d   : > { %v538_v53 = vld [vmem:[#allocation2 + $0x28] sm:$0xff]  ;;  %v543_v3 = vld [vmem:[#allocation2 + $0x50] sm:$0xff] }
  0x5e   : > { %1210 = vmatmul.mubr.msk.bf16.vlgmr.msra.gmra.mrb[0].mxu0 %vm403_vm0, %v1432_v4  ;;  %v534_v56 = vld [vmem:[#allocation2 + $0x8] sm:$0xff]  ;;  %v541_v4 = vld [vmem:[#allocation2 + $0x40] sm:$0xff] }
  0x5f   : > { %1213 = vmatprep.mubr.msk.bf16.mxu0 %vm403_vm0, %v1433_v5 }
  0x66   : > { %1214 = vmatmul.mubr.msk.bf16.gmra.mrb[4].mxu0 %vm403_vm0, %v1434_v6  ;;  %v544_v6 = vld [vmem:[#allocation2 + $0x58] sm:$0xff] }
  0x67   : > { %1217 = vmatprep.mubr.msk.bf16.mxu0 %vm403_vm0, %v1435_v7 }
  0x6e   : > { %1218 = vmatmul.mubr.msk.bf16.gmra.mrb[8].mxu0 %vm403_vm0, %v1436_v8 }
  0x6f   : > { %1221 = vmatprep.mubr.msk.bf16.mxu0 %vm403_vm0, %v1437_v9  ;;  %v542_v9 = vld [vmem:[#allocation2 + $0x48] sm:$0xff] }
  0x76   : > { %1222 = vmatmul.mubr.msk.bf16.gmra.mrb[12].mxu0 %vm403_vm0, %v1438_v10 }
  0x77   : > { %1241 = vmatprep.mubr.bf16.mxu0 %v1443_v12 }
 0x131   : > { %v1211_v13 = vpop.f32.mrb[0].mxu0 }
 0x132   : > { %v462_v14 = vpop.f32.mrb[1].mxu0 }
 0x133   : > { %v1212_v15 = vpop.f32.mrb[2].mxu0 }
 0x134   : > { %v526_v16 = vpack.c.bf16 %v1212_v15, %v1211_v13  ;;  %v465_v17 = vpop.f32.mrb[3].mxu0  ;;  %v547_v15 = vld [vmem:[#allocation2 + $0x70] sm:$0xff] }
 0x135   : > { %v525_v18 = vpack.c.bf16 %v465_v17, %v462_v14 }
 0x137   : > { %1225 = vmatprep.subr.bf16.mxu0 %v525_v18  ;;  %1289 = vmatprep.subr.bf16.mxu1 %v525_v18 }
 0x138   : > { %1226 = vmatpush3.bf16.msra.mxu0 %v525_v18  ;;  %1297 = vmatpush3.bf16.msra.mxu1 %v525_v18  ;;  %v548_v18 = vld [vmem:[#allocation2 + $0x78] sm:$0xff] }
 0x139   : > { %v1215_v19 = vpop.f32.mrb[4].mxu0  ;;  %1227 = vmatprep.subr.bf16.mxu0 %v526_v16  ;;  %1290 = vmatprep.subr.bf16.mxu1 %v526_v16 }
 0x13a   : > { %v478_v20 = vpop.f32.mrb[5].mxu0 }
 0x13b   : > { %v1216_v21 = vpop.f32.mrb[6].mxu0 }
 0x13c   : > { %v528_v22 = vpack.c.bf16 %v1216_v21, %v1215_v19  ;;  %v481_v23 = vpop.f32.mrb[7].mxu0  ;;  %1228 = vmatpush3.bf16.msra.mxu0 %v526_v16  ;;  %1298 = vmatpush3.bf16.msra.mxu1 %v526_v16  ;;  %v545_v16 = vld [vmem:[#allocation2 + $0x60] sm:$0xff]  ;;  %v546_v21 = vld [vmem:[#allocation2 + $0x68] sm:$0xff] }
 0x13d   : > { %v527_v24 = vpack.c.bf16 %v481_v23, %v478_v20 }
 0x13f   : > { %1229 = vmatprep.subr.bf16.mxu0 %v527_v24  ;;  %1291 = vmatprep.subr.bf16.mxu1 %v527_v24 }
 0x140   : > { %1230 = vmatpush3.bf16.msra.mxu0 %v527_v24  ;;  %1299 = vmatpush3.bf16.msra.mxu1 %v527_v24 }
 0x141   : > { %v1219_v25 = vpop.f32.mrb[8].mxu0  ;;  %1231 = vmatprep.subr.bf16.mxu0 %v528_v22  ;;  %1292 = vmatprep.subr.bf16.mxu1 %v528_v22 }
 0x142   : > { %v494_v26 = vpop.f32.mrb[9].mxu0 }
 0x143   : > { %v1220_v27 = vpop.f32.mrb[10].mxu0 }
 0x144   : > { %v530_v28 = vpack.c.bf16 %v1220_v27, %v1219_v25  ;;  %v497_v29 = vpop.f32.mrb[11].mxu0  ;;  %1232 = vmatpush3.bf16.msra.mxu0 %v528_v22  ;;  %1300 = vmatpush3.bf16.msra.mxu1 %v528_v22  ;;  %v1447_v27 = vld [vmem:[%s1987_s4] sm:$0xff] (!%p1145_p7)  }
 0x145   : > { %v529_v30 = vpack.c.bf16 %v497_v29, %v494_v26  ;;  %v1449_v29 = vld [vmem:[%s1987_s4 + $0x10] sm:$0xff] (!%p1145_p7)  }
 0x147   : > { %1233 = vmatprep.subr.bf16.mxu0 %v529_v30  ;;  %1293 = vmatprep.subr.bf16.mxu1 %v529_v30 }
 0x148   : > { %1234 = vmatpush3.bf16.msra.mxu0 %v529_v30  ;;  %1301 = vmatpush3.bf16.msra.mxu1 %v529_v30  ;;  %v1450_v30 = vld [vmem:[%s1987_s4 + $0x18] sm:$0xff] (!%p1145_p7)  }
 0x149   : > { %v1223_v31 = vpop.f32.mrb[12].mxu0  ;;  %1235 = vmatprep.subr.bf16.mxu0 %v530_v28  ;;  %1294 = vmatprep.subr.bf16.mxu1 %v530_v28 }
 0x14a   : > { %v510_v32 = vpop.f32.mrb[13].mxu0 }
 0x14b   : > { %v1224_v33 = vpop.f32.mrb[14].mxu0 }
 0x14c   : > { %v532_v34 = vpack.c.bf16 %v1224_v33, %v1223_v31  ;;  %v513_v35 = vpop.f32.mrb[15].mxu0  ;;  %1236 = vmatpush3.bf16.msra.mxu0 %v530_v28  ;;  %1302 = vmatpush3.bf16.msra.mxu1 %v530_v28  ;;  %v1448_v28 = vld [vmem:[%s1987_s4 + $0x8] sm:$0xff] (!%p1145_p7)   ;;  %v1862_v33 = vld [vmem:[%s1986_s3] ss:$0 sm:$0xff] (!%p1145_p7) }
 0x14d   : > { %v531_v36 = vpack.c.bf16 %v513_v35, %v510_v32 }
 0x14f   : > { %1237 = vmatprep.subr.bf16.mxu0 %v531_v36  ;;  %1295 = vmatprep.subr.bf16.mxu1 %v531_v36 }
 0x150   : > { %1238 = vmatpush3.bf16.msra.mxu0 %v531_v36  ;;  %1303 = vmatpush3.bf16.msra.mxu1 %v531_v36 }
 0x151   : > { %1239 = vmatprep.subr.bf16.mxu0 %v532_v34  ;;  %1296 = vmatprep.subr.bf16.mxu1 %v532_v34 }
 0x154   : > { %1240 = vmatpush3.bf16.msra.mxu0 %v532_v34  ;;  %1304 = vmatpush3.bf16.msra.mxu1 %v532_v34 }
 0x155   : > { %1257 = vmatprep.subr.bf16.mxu0 (!%p1145_p7), %v1447_v27  ;;  %1305 = vmatprep.subr.bf16.mxu1 (!%p1145_p7), %v1447_v27 }
 0x157   : > { %1246 = vmatmul.mubr.bf16.vlgmr.msra.gmra.mrb[0].mxu1 %v1440_v37  ;;  %1242 = vmatmul.mubr.bf16.vlgmr.msra.gmra.mrb[16].mxu0 %v1444_v38 }
 0x158   : > { %1249 = vmatprep.mubr.bf16.mxu1 %v1441_v39  ;;  %1258 = vmatpush3.bf16.msra.mxu0 (!%p1145_p7), %v1447_v27 }
 0x159   : > { %1313 = vmatpush3.bf16.msra.mxu1 (!%p1145_p7), %v1447_v27  ;;  %1259 = vmatprep.subr.bf16.mxu0 (!%p1145_p7), %v1448_v28 }
 0x15a   : > { %1306 = vmatprep.subr.bf16.mxu1 (!%p1145_p7), %v1448_v28 }
 0x15c   : > { %1260 = vmatpush3.bf16.msra.mxu0 (!%p1145_p7), %v1448_v28 }
 0x15d   : > { %1314 = vmatpush3.bf16.msra.mxu1 (!%p1145_p7), %v1448_v28  ;;  %1261 = vmatprep.subr.bf16.mxu0 (!%p1145_p7), %v1449_v29  ;;  %v1147_v28 = vld [vmem:[%s1988_s5] ss:$0 sm:$0xff] (!%p1145_p7) }
 0x15e   : > { %1307 = vmatprep.subr.bf16.mxu1 (!%p1145_p7), %v1449_v29 }
 0x15f   : > { %1250 = vmatmul.mubr.bf16.gmra.mrb[4].mxu1 %v1442_v40 }
 0x160   : > { %1253 = vmatprep.mubr.bf16.mxu1 %v1445_v41  ;;  %1262 = vmatpush3.bf16.msra.mxu0 (!%p1145_p7), %v1449_v29 }
 0x161   : > { %1315 = vmatpush3.bf16.msra.mxu1 (!%p1145_p7), %v1449_v29  ;;  %1263 = vmatprep.subr.bf16.mxu0 (!%p1145_p7), %v1450_v30 }
 0x162   : > { %1308 = vmatprep.subr.bf16.mxu1 (!%p1145_p7), %v1450_v30 }
 0x164   : > { %1264 = vmatpush3.bf16.msra.mxu0 (!%p1145_p7), %v1450_v30 }
 0x165   : > { %1316 = vmatpush3.bf16.msra.mxu1 (!%p1145_p7), %v1450_v30 }
 0x167   : > { %1254 = vmatmul.mubr.bf16.gmra.mrb[8].mxu1 %v1446_v42  ;;  %v1451_v42 = vld [vmem:[%s1987_s4 + $0x20] sm:$0xff] (!%p1145_p7)  }
 0x168   : > { %1265 = vmatprep.subr.bf16.mxu0 (!%p1145_p7), %v1451_v42  ;;  %1309 = vmatprep.subr.bf16.mxu1 (!%p1145_p7), %v1451_v42 }
 0x169   : > { %1266 = vmatpush3.bf16.msra.mxu0 (!%p1145_p7), %v1451_v42  ;;  %1317 = vmatpush3.bf16.msra.mxu1 (!%p1145_p7), %v1451_v42 }
 0x22a   : > { %v1247_v47 = vpop.f32.mrb[0].mxu1  ;;  %v1243_v49 = vpop.f32.mrb[16].mxu0 }
 0x22b   : > { %v716_v51 = vadd.f32 %v1247_v47, %v539_v43  ;;  %v663_v52 = vpop.f32.mrb[1].mxu1  ;;  %v712_v54 = vadd.f32 %v1243_v49, %v535_v44  ;;  %v647_v55 = vpop.f32.mrb[17].mxu0  ;;  %v1452_v47 = vld [vmem:[%s1987_s4 + $0x28] sm:$0xff] (!%p1145_p7)  }
 0x22c   : > { %v714_v57 = vadd.f32 %v663_v52, %v537_v45  ;;  %v1248_v58 = vpop.f32.mrb[2].mxu1  ;;  %v710_v59 = vadd.f32 %v647_v55, %v533_v46  ;;  %v1244_v60 = vpop.f32.mrb[18].mxu0  ;;  %1267 = vmatprep.subr.bf16.mxu0 (!%p1145_p7), %v1452_v47  ;;  %1310 = vmatprep.subr.bf16.mxu1 (!%p1145_p7), %v1452_v47 }
 0x22d   : > { %732 = vst [vmem:[#allocation2 + $0x30] sm:$0xff] %v716_v51  ;;  %v717_v61 = vadd.f32 %v1248_v58, %v540_v48  ;;  %v666_v62 = vpop.f32.mrb[3].mxu1  ;;  %728 = vst [vmem:[#allocation2 + $0x10] sm:$0xff] %v712_v54  ;;  %v713_v63 = vadd.f32 %v1244_v60, %v536_v50  ;;  %v650_v0 = vpop.f32.mrb[19].mxu0  ;;  %v1453_v48 = vld [vmem:[%s1987_s4 + $0x30] sm:$0xff] (!%p1145_p7)   ;;  %1268 = vmatpush3.bf16.msra.mxu0 (!%p1145_p7), %v1452_v47  ;;  %1318 = vmatpush3.bf16.msra.mxu1 (!%p1145_p7), %v1452_v47 }
 0x22e   : > { %730 = vst [vmem:[#allocation2 + $0x20] sm:$0xff] %v714_v57  ;;  %v715_v1 = vadd.f32 %v666_v62, %v538_v53  ;;  %726 = vst [vmem:[#allocation2] sm:$0xff] %v710_v59  ;;  %v711_v2 = vadd.f32 %v650_v0, %v534_v56  ;;  %1269 = vmatprep.subr.bf16.mxu0 (!%p1145_p7), %v1453_v48  ;;  %1311 = vmatprep.subr.bf16.mxu1 (!%p1145_p7), %v1453_v48 }
 0x22f   : > { %733 = vst [vmem:[#allocation2 + $0x38] sm:$0xff] %v717_v61  ;;  %729 = vst [vmem:[#allocation2 + $0x18] sm:$0xff] %v713_v63 }
 0x230   : > { %731 = vst [vmem:[#allocation2 + $0x28] sm:$0xff] %v715_v1  ;;  %727 = vst [vmem:[#allocation2 + $0x8] sm:$0xff] %v711_v2  ;;  %v1454_v1 = vld [vmem:[%s1987_s4 + $0x38] sm:$0xff] (!%p1145_p7)  }
 0x231   : > { %1270 = vmatpush3.bf16.msra.mxu0 (!%p1145_p7), %v1453_v48  ;;  %1319 = vmatpush3.bf16.msra.mxu1 (!%p1145_p7), %v1453_v48 }
 0x232   : > { %v1251_v5 = vpop.f32.mrb[4].mxu1  ;;  %1271 = vmatprep.subr.bf16.mxu0 (!%p1145_p7), %v1454_v1  ;;  %1312 = vmatprep.subr.bf16.mxu1 (!%p1145_p7), %v1454_v1 }
 0x233   : > { %v720_v7 = vadd.f32 %v1251_v5, %v543_v3  ;;  %v679_v8 = vpop.f32.mrb[5].mxu1 }
 0x234   : > { %v718_v10 = vadd.f32 %v679_v8, %v541_v4  ;;  %v1252_v11 = vpop.f32.mrb[6].mxu1  ;;  %v748_v49 = vld [vmem:[#allocation2 + $0x10] sm:$0xff] (!%p1145_p7) }
 0x235   : > { %736 = vst [vmem:[#allocation2 + $0x50] sm:$0xff] %v720_v7  ;;  %v721_v12 = vadd.f32 %v1252_v11, %v544_v6  ;;  %v682_v13 = vpop.f32.mrb[7].mxu1  ;;  %v746_v31 = vld [vmem:[#allocation2] sm:$0xff] (!%p1145_p7)  ;;  %v771_v57 = vadd.f32 (!%p1145_p7), %v1862_v33, %v748_v49  ;;  %v752_v6 = vld [vmem:[#allocation2 + $0x30] sm:$0xff] (!%p1145_p7)  ;;  %1272 = vmatpush3.bf16.msra.mxu0 (!%p1145_p7), %v1454_v1  ;;  %1320 = vmatpush3.bf16.msra.mxu1 (!%p1145_p7), %v1454_v1 }
 0x236   : > { %734 = vst [vmem:[#allocation2 + $0x40] sm:$0xff] %v718_v10  ;;  %v719_v14 = vadd.f32 %v682_v13, %v542_v9  ;;  %v769_v34 = vadd.f32 (!%p1145_p7), %v1862_v33, %v746_v31  ;;  %v749_v50 = vld [vmem:[#allocation2 + $0x18] sm:$0xff] (!%p1145_p7)  ;;  %v750_v53 = vld [vmem:[#allocation2 + $0x20] sm:$0xff] (!%p1145_p7) }
 0x237   : > { %737 = vst [vmem:[#allocation2 + $0x58] sm:$0xff] %v721_v12  ;;  %v747_v32 = vld [vmem:[#allocation2 + $0x8] sm:$0xff] (!%p1145_p7)  ;;  %v772_v58 = vadd.f32 (!%p1145_p7), %v1862_v33, %v749_v50  ;;  %v773_v61 = vadd.f32 (!%p1145_p7), %v1862_v33, %v750_v53  ;;  %v787_v2 = vmax.f32 (!%p1145_p7), %v771_v57, 0.0  ;;  %v753_v7 = vld [vmem:[#allocation2 + $0x38] sm:$0xff] (!%p1145_p7) }
 0x238   : > { %735 = vst [vmem:[#allocation2 + $0x48] sm:$0xff] %v719_v14  ;;  %v770_v35 = vadd.f32 (!%p1145_p7), %v1862_v33, %v747_v32  ;;  %v785_v40 = vmax.f32 (!%p1145_p7), %v769_v34, 0.0  ;;  %v751_v54 = vld [vmem:[#allocation2 + $0x28] sm:$0xff] (!%p1145_p7) }
 0x239   : > { %v774_v62 = vadd.f32 (!%p1145_p7), %v1862_v33, %v751_v54  ;;  %v788_v3 = vmax.f32 (!%p1145_p7), %v772_v58, 0.0  ;;  %v789_v8 = vmax.f32 (!%p1145_p7), %v773_v61, 0.0 }
 0x23a   : > { %v1255_v17 = vpop.f32.mrb[8].mxu1  ;;  %745 = sbr.rel (%p1145_p7) target bundleno = 809 (0x329), region = 56  ;;  %v786_v41 = vmax.f32 (!%p1145_p7), %v770_v35, 0.0 }
 0x23b   : > { %v724_v19 = vadd.f32 %v1255_v17, %v547_v15  ;;  %v695_v20 = vpop.f32.mrb[9].mxu1  ;;  %v790_v9 = vmax.f32 (!%p1145_p7), %v774_v62, 0.0  ;;  %v802_v14 = vpack.c.bf16 (!%p1145_p7), %v788_v3, %v787_v2  ;;  %v775_v15 = vadd.f32 (!%p1145_p7), %v1862_v33, %v752_v6 }
 0x23c   : > { %v722_v22 = vadd.f32 %v695_v20, %v545_v16  ;;  %v1256_v23 = vpop.f32.mrb[10].mxu1  ;;  %v801_v45 = vpack.c.bf16 (!%p1145_p7), %v786_v41, %v785_v40  ;;  %v756_v51 = vld [vmem:[#allocation2 + $0x50] sm:$0xff] (!%p1145_p7)  ;;  %v776_v17 = vadd.f32 (!%p1145_p7), %v1862_v33, %v753_v7 }
 0x23d   : > { %740 = vst [vmem:[#allocation2 + $0x70] sm:$0xff] %v724_v19  ;;  %v725_v24 = vadd.f32 %v1256_v23, %v548_v18  ;;  %v698_v25 = vpop.f32.mrb[11].mxu1  ;;  %v754_v36 = vld [vmem:[#allocation2 + $0x40] sm:$0xff] (!%p1145_p7)  ;;  %v779_v59 = vadd.f32 (!%p1145_p7), %v1862_v33, %v756_v51  ;;  %v803_v20 = vpack.c.bf16 (!%p1145_p7), %v790_v9, %v789_v8 }
 0x23e   : > { %738 = vst [vmem:[#allocation2 + $0x60] sm:$0xff] %v722_v22  ;;  %v723_v26 = vadd.f32 %v698_v25, %v546_v21  ;;  %v777_v38 = vadd.f32 (!%p1145_p7), %v1862_v33, %v754_v36  ;;  %1273 = vmatprep.mubr.bf16.mxu0 (!%p1145_p7), %v801_v45  ;;  %v757_v52 = vld [vmem:[#allocation2 + $0x58] sm:$0xff] (!%p1145_p7)  ;;  %v791_v22 = vmax.f32 (!%p1145_p7), %v775_v15, 0.0  ;;  %v792_v23 = vmax.f32 (!%p1145_p7), %v776_v17, 0.0 }
 0x23f   : > { %741 = vst [vmem:[#allocation2 + $0x78] sm:$0xff] %v725_v24  ;;  %v755_v37 = vld [vmem:[#allocation2 + $0x48] sm:$0xff] (!%p1145_p7)  ;;  %v780_v60 = vadd.f32 (!%p1145_p7), %v1862_v33, %v757_v52  ;;  %v795_v4 = vmax.f32 (!%p1145_p7), %v779_v59, 0.0  ;;  %1274 = vmatmul.mubr.bf16.vlgmr.msra.gmra.mrb[0].mxu0 (!%p1145_p7), %v802_v14 }
 0x240   : > { %739 = vst [vmem:[#allocation2 + $0x68] sm:$0xff] %v723_v26  ;;  %v778_v39 = vadd.f32 (!%p1145_p7), %v1862_v33, %v755_v37  ;;  %v793_v43 = vmax.f32 (!%p1145_p7), %v777_v38, 0.0  ;;  %1277 = vmatprep.mubr.bf16.mxu0 (!%p1145_p7), %v803_v20  ;;  %v804_v26 = vpack.c.bf16 (!%p1145_p7), %v792_v23, %v791_v22 }
 0x241   : > { %v796_v5 = vmax.f32 %v780_v60, 0.0 }
 0x242   : > { %v794_v44 = vmax.f32 %v778_v39, 0.0 }
 0x243   : > { %v806_v16 = vpack.c.bf16 %v796_v5, %v795_v4 }
 0x244   : > { %v805_v46 = vpack.c.bf16 %v794_v44, %v793_v43  ;;  %v760_v12 = vld [vmem:[#allocation2 + $0x70] sm:$0xff] }
 0x245   : > { %v758_v55 = vld [vmem:[#allocation2 + $0x60] sm:$0xff]  ;;  %v783_v18 = vadd.f32 %v1862_v33, %v760_v12 }
 0x246   : > { %1281 = vmatprep.mubr.bf16.mxu1 %v805_v46  ;;  %v781_v63 = vadd.f32 %v1862_v33, %v758_v55  ;;  %v761_v13 = vld [vmem:[#allocation2 + $0x78] sm:$0xff] }
 0x247   : > { %v759_v56 = vld [vmem:[#allocation2 + $0x68] sm:$0xff]  ;;  %v784_v19 = vadd.f32 %v1862_v33, %v761_v13  ;;  %1282 = vmatmul.mubr.bf16.vlgmr.msra.gmra.mrb[0].mxu1 %v806_v16  ;;  %v799_v24 = vmax.f32 %v783_v18, 0.0  ;;  %1278 = vmatmul.mubr.bf16.gmra.mrb[4].mxu0 %v804_v26 }
 0x248   : > { %v782_v0 = vadd.f32 %v1862_v33, %v759_v56  ;;  %v797_v10 = vmax.f32 %v781_v63, 0.0 }
 0x249   : > { %v800_v25 = vmax.f32 %v784_v19, 0.0 }
 0x24a   : > { %v798_v11 = vmax.f32 %v782_v0, 0.0 }
 0x24b   : > { %v808_v27 = vpack.c.bf16 %v800_v25, %v799_v24 }
 0x24c   : > { %v807_v21 = vpack.c.bf16 %v798_v11, %v797_v10 }
 0x24e   : > { %1285 = vmatprep.mubr.bf16.mxu1 %v807_v21 }
 0x24f   : > { %1286 = vmatmul.mubr.bf16.gmra.mrb[4].mxu1 %v808_v27 }
 0x312   : > { %v1275_v29 = vpop.f32.mrb[0].mxu0 }
 0x313   : > { %v923_v31 = vadd.f32 %v1275_v29, %v1147_v28  ;;  %v914_v33 = vpop.f32.mrb[1].mxu0 }
 0x314   : > { %v915_v35 = vadd.f32 %v1147_v28, %v914_v33  ;;  %v1276_v37 = vpop.f32.mrb[2].mxu0 }
 0x315   : > { %979 = vst [vmem:[%s1813_s17 + $0x10] sm:$0xff] %v923_v31  ;;  %v926_v39 = vadd.f32 %v1276_v37, %v1147_v28  ;;  %v917_v41 = vpop.f32.mrb[3].mxu0 }
 0x316   : > { %977 = vst [vmem:[%s1813_s17] sm:$0xff] %v915_v35  ;;  %v918_v43 = vadd.f32 %v1147_v28, %v917_v41 }
 0x317   : > { %980 = vst [vmem:[%s1813_s17 + $0x18] sm:$0xff] %v926_v39 }
 0x318   : > { %978 = vst [vmem:[%s1813_s17 + $0x8] sm:$0xff] %v918_v43 }
 0x31a   : > { %v1283_v30 = vpop.f32.mrb[0].mxu1  ;;  %v1279_v45 = vpop.f32.mrb[4].mxu0 }
 0x31b   : > { %v955_v32 = vadd.f32 %v1283_v30, %v1147_v28  ;;  %v946_v34 = vpop.f32.mrb[1].mxu1  ;;  %v939_v47 = vadd.f32 %v1279_v45, %v1147_v28  ;;  %v930_v49 = vpop.f32.mrb[5].mxu0 }
 0x31c   : > { %v947_v36 = vadd.f32 %v1147_v28, %v946_v34  ;;  %v1284_v38 = vpop.f32.mrb[2].mxu1  ;;  %v931_v51 = vadd.f32 %v1147_v28, %v930_v49  ;;  %v1280_v53 = vpop.f32.mrb[6].mxu0 }
 0x31d   : > { %987 = vst [vmem:[%s1813_s17 + $0x50] sm:$0xff] %v955_v32  ;;  %v958_v40 = vadd.f32 %v1284_v38, %v1147_v28  ;;  %v949_v42 = vpop.f32.mrb[3].mxu1  ;;  %983 = vst [vmem:[%s1813_s17 + $0x30] sm:$0xff] %v939_v47  ;;  %v942_v55 = vadd.f32 %v1280_v53, %v1147_v28  ;;  %v933_v57 = vpop.f32.mrb[7].mxu0 }
 0x31e   : > { %985 = vst [vmem:[%s1813_s17 + $0x40] sm:$0xff] %v947_v36  ;;  %v950_v44 = vadd.f32 %v1147_v28, %v949_v42  ;;  %981 = vst [vmem:[%s1813_s17 + $0x20] sm:$0xff] %v931_v51  ;;  %v934_v59 = vadd.f32 %v1147_v28, %v933_v57 }
 0x31f   : > { %988 = vst [vmem:[%s1813_s17 + $0x58] sm:$0xff] %v958_v40  ;;  %984 = vst [vmem:[%s1813_s17 + $0x38] sm:$0xff] %v942_v55 }
 0x320   : > { %986 = vst [vmem:[%s1813_s17 + $0x48] sm:$0xff] %v950_v44  ;;  %982 = vst [vmem:[%s1813_s17 + $0x28] sm:$0xff] %v934_v59 }
 0x322   : > { %v1287_v46 = vpop.f32.mrb[4].mxu1 }
 0x323   : > { %v971_v48 = vadd.f32 %v1287_v46, %v1147_v28  ;;  %v962_v50 = vpop.f32.mrb[5].mxu1 }
 0x324   : > { %v963_v52 = vadd.f32 %v1147_v28, %v962_v50  ;;  %v1288_v54 = vpop.f32.mrb[6].mxu1 }
 0x325   : > { %991 = vst [vmem:[%s1813_s17 + $0x70] sm:$0xff] %v971_v48  ;;  %v974_v56 = vadd.f32 %v1288_v54, %v1147_v28  ;;  %v965_v58 = vpop.f32.mrb[7].mxu1 }
 0x326   : > { %989 = vst [vmem:[%s1813_s17 + $0x60] sm:$0xff] %v963_v52  ;;  %v966_v60 = vadd.f32 %v1147_v28, %v965_v58 }
 0x327   : > { %992 = vst [vmem:[%s1813_s17 + $0x78] sm:$0xff] %v974_v56 }
 0x328   : > { %990 = vst [vmem:[%s1813_s17 + $0x68] sm:$0xff] %v966_v60 }
 0x329 PF: > { %s2004_s16 = sld [smem:[#allocation9_spill]]  ;;  %s2005_s28 = sld [smem:[#allocation13_spill]] }
 0x32a   : > { %s1007_s11 = sshll.u32 %s1813_s17, 4  ;;  %s1922_s14 = scalar_lea.sflag [#allocation5], %s299_s6  ;;  %s1918_s11 = int_to_ptr.vmem [resolvable:$true] %s1007_s11 }
 0x32b   : > { %s1485_s13 = scalar_lea.vmem %s1918_s11, 2048  ;;  %p2007_p0 = scmp.ne.s32.totalorder %s2000_s19, 0 }
 0x32c   : > { %p1486_p4 = scmp.ne.s32.totalorder %s1918_s11, %s1485_s13  ;;  %s1614_s27 = smov [#allocation6]  }
 0x32d   : > { %s1489_s20 = sshll.u32 %s1614_s27, 4  ;;  %s1490_s20 = int_to_ptr.vmem [resolvable:$false] %s1489_s20 }
 0x32e   : > { %p1487_p1 = pnand %p1486_p4, %p2007_p0  ;;  %p1492_p8 = scmp.lt.s32.totalorder %s1918_s11, %s1490_s20 }
 0x32f   : > { %s1162_s18 = sshll.u32 %s2004_s16, 11  ;;  %s2006_s12 = smov %s2005_s28 }
 0x330   : > { %s1915_s9 = scalar_lea.hbm %s2005_s28, %s1162_s18  ;;  %p1488_p5 = pneg %p1487_p1 }
 0x331   : > { %s1491_s16 = scalar_lea.vmem %s1490_s20, 4096 }
 0x332   : > { %p1493_p3 = scmp.lt.s32.totalorder %s1491_s16, %s1485_s13 }
 0x334   : > { %p1494_p10 = por %p1493_p3, %p1492_p8 }
 0x336   : > { %p1495_p11 = pnand %p1494_p10, %p1488_p5 }
 0x338   : > { %1498 = shalt.err (!%p1495_p11)
}
 0x339   : > { %s1499_s6 = scalar_lea.hbm %s1915_s9, 2048  ;;  %s1503_s8 = scalar_lea.hbm %s2006_s12, 4096 }
 0x33a   : > { %p1500_p6 = scmp.ne.s32.totalorder %s1915_s9, %s1499_s6  ;;  %p1504_p12 = scmp.lt.u32.totalorder %s1915_s9, %s2006_s12 }
 0x33b   : > { %p1505_p2 = scmp.lt.u32.totalorder %s1503_s8, %s1499_s6  ;;  %p1507_p4 = scmp.lt.u32.totalorder %s1499_s6, %s1915_s9 }
 0x33c   : > { %p1501_p9 = pnand %p1500_p6, %p2007_p0 }
 0x33d   : > { %p1506_p7 = por %p1505_p2, %p1504_p12 }
 0x33e   : > { %p1502_p13 = pneg %p1501_p9 }
 0x33f   : > { %p1508_p1 = por %p1507_p4, %p1506_p7 }
 0x341   : > { %p1509_p5 = pnand %p1508_p1, %p1502_p13 }
 0x343   : > { %1512 = shalt.err (!%p1509_p5)
}
 0x344   : > { %s1615_s13 = smov 128   ;;  %s1616_s27 = smov 8  }
 0x345   : > { %1323 = dma.vmem_to_hbm [thread:$0]  (%p2007_p0), %s1918_s11, 2048, %s1915_s9, %s1922_s14, %s1615_s13, %s1615_s13, %s1616_s27  }
 0x346 PF: > { %p1334_p8 = scmp.ge.s32.totalorder %s1607_s7, 2  ;;  %s1022_s20 = sand.u32 1, %s1567_s21  }
 0x347   : > { %p2008_p3 = scmp.ne.s32.totalorder %s2002_s10, 0  ;;  %s1023_s16 = scalar_lea.sflag [#allocation5], %s1022_s20 }
 0x349   : > { %p1330_p10 = pnand %p1334_p8, %p2008_p3 }
 0x34b   : > { %1562 = dma.done.wait (!%p1330_p10), %s1023_s16, 2048  }
 0x34c   : > { %1564 = vsyncadd (!%p1330_p10), %s1023_s16, 4294965248  ;;  %s22_s7 = sadd.s32 1, %s1607_s7   ;;  %s2009_s6 = sld [smem:[#allocation12_spill]] }
 0x34d   : > { %p19_p11 = scmp.ge.s32.totalorder %s22_s7, 6   ;;  %s2010_s19 = smov %s1742_s24 }
 0x34e   : > { %s2011_s9 = sld [smem:[#allocation10_spill]]  ;;  %s2012_s11 = sld [smem:[#allocation11_spill]] }
 0x34f   : > { %s2013_s21 = smov %s1571_s22  ;;  %s2014_s22 = smov %s1575_s23 }
 0x350   : > { %s2016_s24 = smov %s1583_s25  ;;  %s2017_s25 = smov %s1587_s26 }
 0x351   : > { %s2018_s26 = smov %s2010_s19  ;;  %s2019_s27 = smov %s1599_s29 }
 0x352   : > { %s2015_s23 = smov %s2009_s6  ;;  %s2020_s28 = smov %s1603_s30 }
 0x353   :  { %21 = sbr.rel (!%p19_p11) target bundleno = 11 (0xb), region = 100 }
 0x354   : > { %s2021_s29 = smov %s2011_s9  ;;  %s2022_s30 = smov %s2012_s11 }
 0x35a   :  { %1028 = vsyncpa [#allocation4], 1 }
 0x35b   :  { %1030 = vsyncpa [#allocation4 + $0x1], 1 }
 0x35c   :  { %1031 = vsyncpa [#allocation5], 1 }
 0x35d   :  { %1033 = vsyncpa [#allocation5 + $0x1], 1 }

</bundles_post_ra>
